<compile_context>
chip_gen: v6e
topology: v6e:2x2x1
jax: 0.10.0
libtpu: 0.0.40
codegen_flags: <defaults>
</compile_context>

<pallas_src>
import functools

import jax
import jax.numpy as jnp
from jax import lax
from jax.experimental import pallas as pl
from jax.experimental.pallas import tpu as pltpu


def _round_up(x, m):
    return (x + m - 1) // m * m


def _cdiv(a, b):
    return -(-a // b)


def _decoder_kernel(inp_ref, w1_ref, b1_ref, w2_ref, b2_ref, w3t_ref, b3t_ref,
                    out_ref, *, inv_n_samples):
    s_step = pl.program_id(1)
    n_s_steps = pl.num_programs(1)

    sb, tb, kp = inp_ref.shape

    # Flatten the sample block into the matmul M dimension (tile-aligned
    # collapse: tb is a multiple of 128, kp a multiple of 128).
    x = inp_ref[...].reshape(sb * tb, kp)                       # bf16

    # Layer 1: single full-K bf16 matmul (r|z|x packed+padded host-side),
    # f32 accumulation on the MXU.
    h = jnp.dot(x, w1_ref[...], preferred_element_type=jnp.float32) + b1_ref[...]
    h = jnp.maximum(h, 0.0)                                     # ReLU
    # Layer 2 (bf16 operands, f32 accumulate).
    h = jnp.dot(h.astype(jnp.bfloat16), w2_ref[...],
                preferred_element_type=jnp.float32) + b2_ref[...]
    h = jnp.maximum(h, 0.0)                                     # ReLU

    # Layer 3 is linear in h, so the sample-block reduction commutes with it:
    # sum h over the sample sub-block first (cuts layer-3 M by sb).
    h_sum = jnp.sum(h.reshape(sb, tb, -1), axis=0)              # (tb, H2p) f32

    # (2, tb) = W3^T contracted with h_sum over H2p -> result is already
    # lane-dense (targets on the lane axis), so no masked stores downstream.
    ms_t = lax.dot_general(w3t_ref[...], h_sum.astype(jnp.bfloat16),
                           (((1,), (1,)), ((), ())),
                           preferred_element_type=jnp.float32)  # (2, tb)

    # Accumulate directly into the resident lane-dense output block.
    @pl.when(s_step == 0)
    def _():
        out_ref[...] = ms_t

    @pl.when(s_step != 0)
    def _():
        out_ref[...] = out_ref[...] + ms_t

    # Finalize: mean over all samples (+ layer-3 bias, identical per sample,
    # added exactly once here), then sigma = 0.1 + 0.9*softplus on row 1.
    @pl.when(s_step == n_s_steps - 1)
    def _():
        mean_ms = out_ref[...] * inv_n_samples + b3t_ref[...]
        row = lax.broadcasted_iota(jnp.int32, mean_ms.shape, 0)
        sp = jnp.maximum(mean_ms, 0.0) + jnp.log1p(jnp.exp(-jnp.abs(mean_ms)))
        out_ref[...] = jnp.where(row == 0, mean_ms, 0.1 + 0.9 * sp)


def prepare_decoder_params(params):
    """One-time host-side prep: zero-pad the input/hidden dims to lane
    multiples (128), cast matmul weights to bf16 (native MXU rate), keep biases
    f32, and pre-transpose W3/b3 so the kernel's layer-3 output is lane-dense.
    Zero padding is exact, so the math is unchanged."""
    w1, b1, w2, b2, w3, b3 = params
    d_in, h1 = w1.shape
    h2 = w2.shape[1]
    kp, h1p, h2p = _round_up(d_in, 128), _round_up(h1, 128), _round_up(h2, 128)

    w1p = jnp.pad(w1, ((0, kp - d_in), (0, h1p - h1))).astype(jnp.bfloat16)
    b1p = jnp.pad(b1, ((0, 0), (0, h1p - h1))).astype(jnp.float32)
    w2p = jnp.pad(w2, ((0, h1p - h1), (0, h2p - h2))).astype(jnp.bfloat16)
    b2p = jnp.pad(b2, ((0, 0), (0, h2p - h2))).astype(jnp.float32)
    w3t = jnp.pad(w3, ((0, h2p - h2), (0, 0))).T.astype(jnp.bfloat16)   # (2, H2p)
    b3t = b3.reshape(1, 2).T.astype(jnp.float32)                        # (2, 1)
    return w1p, b1p, w2p, b2p, w3t, b3t


def _estimate_vmem_bytes(s_blk, t_blk, kp, h1p, h2p):
    rows = s_blk * t_blk
    # pallas_call double-buffers pipelined blocks.
    blocks = 2 * (s_blk * t_blk * kp * 2          # packed input (bf16)
                  + kp * h1p * 2 + h1p * 4        # W1 (bf16) + b1 (f32)
                  + h1p * h2p * 2 + h2p * 4       # W2 (bf16) + b2 (f32)
                  + 2 * h2p * 2 + 2 * 4           # W3^T (bf16) + b3^T (f32)
                  + 2 * t_blk * 4)                # output block (f32)
    interm = (rows * kp * 2                        # flattened input view
              + rows * h1p * 4 + rows * h2p * 4    # h1, h2 (f32)
              + t_blk * h2p * 4 + 2 * t_blk * 4)   # h_sum, ms_t
    return blocks + interm


@jax.jit
def decoder_forward(r, z, target_x, prep_params):
    """r, z: [S, T, hidden_dim]; target_x: [S, T, x_dim].
    Returns (mu, sigma), each [T] (matching PyTorch mean(dim=0).squeeze())."""
    w1p, b1p, w2p, b2p, w3t, b3t = prep_params
    S, T, _ = r.shape
    kp, h1p = w1p.shape
    h2p = w2p.shape[1]

    # --- T tiling: balanced, lane-aligned tiles (avoid near-2x padding blowup
    # and keep the (2, T_BLK) output block unmasked). Ensure >= 2 "parallel"
    # tiles when possible so both v7x TensorCores get work.
    n_t = _cdiv(T, 512)
    t_blk = _round_up(_cdiv(T, n_t), 128)
    if T > 128 and _round_up(T, t_blk) // t_blk < 2:
        t_blk = _round_up(_cdiv(T, 2), 128)
    t_pad = _round_up(T, t_blk)

    # --- Sample-axis blocking: largest divisor of S (<= 16); small S collapses
    # into a single grid step. (S is never padded: padded samples would leak
    # bias terms into the mean.)
    if S <= 16:
        s_blk = S
    else:
        s_blk = next((d for d in (16, 8, 4, 2) if S % d == 0), 1)

    # --- Keep the working set inside a portable VMEM budget (v7x: 64 MiB phys).
    budget = 40 << 20
    while _estimate_vmem_bytes(s_blk, t_blk, kp, h1p, h2p) > budget:
        if s_blk > 1:
            s_blk = max(d for d in (1, 2, 4, 8) if d < s_blk and S % d == 0)
        elif t_blk > 128:
            t_blk -= 128
            t_pad = _round_up(T, t_blk)
        else:
            break
    n_s_steps = S // s_blk
    vmem_limit = int(min(64 << 20,
                         max(16 << 20,
                             1.5 * _estimate_vmem_bytes(s_blk, t_blk, kp, h1p, h2p))))

    # --- Pack layer-1 inputs into one lane-padded bf16 operand (full MXU K;
    # removes the 64x lane-padded standalone x stream and two input pipelines).
    inp = jnp.concatenate([r, z, target_x], axis=-1)
    d_in = inp.shape[-1]
    inp = jnp.pad(inp, ((0, 0), (0, t_pad - T), (0, kp - d_in))).astype(jnp.bfloat16)

    kernel = functools.partial(_decoder_kernel, inv_n_samples=1.0 / S)

    def const2(shape):
        return pl.BlockSpec(shape, lambda t, s: (0, 0))

    out = pl.pallas_call(
        kernel,
        out_shape=jax.ShapeDtypeStruct((2, t_pad), jnp.float32),
        grid_spec=pltpu.PrefetchScalarGridSpec(
            num_scalar_prefetch=0,
            grid=(t_pad // t_blk, n_s_steps),
            in_specs=[
                pl.BlockSpec((s_blk, t_blk, kp), lambda t, s: (s, t, 0)),  # r|z|x packed
                const2((kp, h1p)),    # W1
                const2((1, h1p)),     # b1
                const2((h1p, h2p)),   # W2
                const2((1, h2p)),     # b2
                const2((2, h2p)),     # W3^T
                const2((2, 1)),       # b3^T
            ],
            out_specs=pl.BlockSpec((2, t_blk), lambda t, s: (0, t)),
        ),
        compiler_params=pltpu.CompilerParams(
            dimension_semantics=("parallel", "arbitrary"),
            vmem_limit_bytes=vmem_limit),
    )(inp, w1p, b1p, w2p, b2p, w3t, b3t)

    mu = out[0, :T]
    sigma = out[1, :T]
    # TODO(synk): torch.distributions.Normal has no Pallas/JAX-array equivalent
    # to return from a kernel; (mu, sigma) fully parameterize it.
    return mu, sigma


def init_params(key, x_dim, hidden_dim, neuron_list):
    """MLP(x_dim + 2*hidden_dim, neuron_list + [2]): Linear+ReLU stack, last Linear linear."""
    dims = [x_dim + 2 * hidden_dim] + list(neuron_list) + [2]
    params = []
    for i in range(len(dims) - 1):
        key, kw, kb = jax.random.split(key, 3)
        fan_in = dims[i]
        w = jax.random.normal(kw, (dims[i], dims[i + 1]), jnp.float32) / jnp.sqrt(fan_in)
        b = 0.01 * jax.random.normal(kb, (1, dims[i + 1]), jnp.float32)
        params += [w, b]
    return tuple(params)


if __name__ == "__main__":
    # Small shapes consistent with the module's forward.
    S = 2            # latent samples (mean(dim=0) axis)
    T = 16           # number of target points
    x_dim = 2
    hidden_dim = 32
    neuron_list = [64, 64]

    key = jax.random.PRNGKey(0)
    k_r, k_z, k_x, k_p = jax.random.split(key, 4)
    r = jax.random.normal(k_r, (S, T, hidden_dim), jnp.float32)
    z = jax.random.normal(k_z, (S, T, hidden_dim), jnp.float32)
    target_x = jax.random.normal(k_x, (S, T, x_dim), jnp.float32)

    params = init_params(k_p, x_dim, hidden_dim, neuron_list)
    prep = prepare_decoder_params(params)

    mu, sigma = decoder_forward(r, z, target_x, prep)
    jax.block_until_ready((mu, sigma))

    # Pure-JAX f32 reference (same math, no Pallas). The kernel uses bf16 MXU
    # operands with f32 accumulation, so tolerance is loosened accordingly.
    w1, b1, w2, b2, w3, b3 = params
    inp = jnp.concatenate([r, z, target_x], axis=-1)
    h = jnp.maximum(inp @ w1 + b1, 0.0)
    h = jnp.maximum(h @ w2 + b2, 0.0)
    ms = h @ w3 + b3
    mu_ref = jnp.mean(ms[..., 0:1], axis=0).squeeze()
    ls_ref = jnp.mean(ms[..., 1:2], axis=0).squeeze()
    sigma_ref = 0.1 + 0.9 * jax.nn.softplus(ls_ref)

    assert mu.shape == (T,) and sigma.shape == (T,)
    assert jnp.allclose(mu, mu_ref, atol=1e-1, rtol=1e-1)
    assert jnp.allclose(sigma, sigma_ref, atol=1e-1, rtol=1e-1)

    print("KERNEL_OK")
</pallas_src>

<mosaic_0001>
module attributes {stable_mosaic.version = 11 : i64} {
  func.func @_decoder_kernel(%arg0: i32, %arg1: i32, %arg2: memref<2x128x128xbf16, #tpu.memory_space<vmem>>, %arg3: memref<128x128xbf16, #tpu.memory_space<vmem>>, %arg4: memref<1x128xf32, #tpu.memory_space<vmem>>, %arg5: memref<128x128xbf16, #tpu.memory_space<vmem>>, %arg6: memref<1x128xf32, #tpu.memory_space<vmem>>, %arg7: memref<2x128xbf16, #tpu.memory_space<vmem>>, %arg8: memref<2x1xf32, #tpu.memory_space<vmem>>, %arg9: memref<2x128xf32, #tpu.memory_space<vmem>>) attributes {dimension_semantics = [#tpu.dimension_semantics<parallel>, #tpu.dimension_semantics<arbitrary>], iteration_bounds = array<i64: 1, 1>, scalar_prefetch = 0 : i64, scratch_operands = 0 : i64, tpu.core_type = #tpu.core_type<tc>, window_params = [{transform_indices = @transform_0, window_bounds = array<i64: 2, 128, 128>}, {pipeline_mode = #tpu.pipeline_mode<synchronous>, transform_indices = @transform_1, window_bounds = array<i64: 128, 128>}, {pipeline_mode = #tpu.pipeline_mode<synchronous>, transform_indices = @transform_2, window_bounds = array<i64: 1, 128>}, {pipeline_mode = #tpu.pipeline_mode<synchronous>, transform_indices = @transform_3, window_bounds = array<i64: 128, 128>}, {pipeline_mode = #tpu.pipeline_mode<synchronous>, transform_indices = @transform_4, window_bounds = array<i64: 1, 128>}, {pipeline_mode = #tpu.pipeline_mode<synchronous>, transform_indices = @transform_5, window_bounds = array<i64: 2, 128>}, {pipeline_mode = #tpu.pipeline_mode<synchronous>, transform_indices = @transform_6, window_bounds = array<i64: 2, 1>}, {transform_indices = @transform_7, window_bounds = array<i64: 2, 128>}]} {
    %c0 = arith.constant 0 : index
    %c0_0 = arith.constant 0 : index
    %c0_1 = arith.constant 0 : index
    %0 = vector.load %arg2[%c0, %c0_0, %c0_1] : memref<2x128x128xbf16, #tpu.memory_space<vmem>>, vector<2x128x128xbf16>
    %1 = vector.shape_cast %0 : vector<2x128x128xbf16> to vector<256x128xbf16>
    %c0_2 = arith.constant 0 : index
    %c0_3 = arith.constant 0 : index
    %2 = vector.load %arg3[%c0_2, %c0_3] : memref<128x128xbf16, #tpu.memory_space<vmem>>, vector<128x128xbf16>
    %cst = arith.constant dense<0.000000e+00> : vector<256x128xf32>
    %3 = tpu.matmul %1, %2, %cst {dimension_numbers = #tpu.dot_dimension_numbers<[1], [0], [0], [1], [0, 0, 1, 1], [], []>} : vector<256x128xbf16>, vector<128x128xbf16>, vector<256x128xf32> -> vector<256x128xf32>
    %c0_4 = arith.constant 0 : index
    %c0_5 = arith.constant 0 : index
    %4 = vector.load %arg4[%c0_4, %c0_5] : memref<1x128xf32, #tpu.memory_space<vmem>>, vector<1x128xf32>
    %5 = vector.broadcast %4 : vector<1x128xf32> to vector<256x128xf32>
    %6 = arith.addf %3, %5 : vector<256x128xf32>
    %cst_6 = arith.constant 0.000000e+00 : f32
    %7 = vector.broadcast %cst_6 : f32 to vector<256x128xf32>
    %8 = arith.maximumf %6, %7 : vector<256x128xf32>
    %9 = arith.truncf %8 : vector<256x128xf32> to vector<256x128xbf16>
    %c0_7 = arith.constant 0 : index
    %c0_8 = arith.constant 0 : index
    %10 = vector.load %arg5[%c0_7, %c0_8] : memref<128x128xbf16, #tpu.memory_space<vmem>>, vector<128x128xbf16>
    %cst_9 = arith.constant dense<0.000000e+00> : vector<256x128xf32>
    %11 = tpu.matmul %9, %10, %cst_9 {dimension_numbers = #tpu.dot_dimension_numbers<[1], [0], [0], [1], [0, 0, 1, 1], [], []>} : vector<256x128xbf16>, vector<128x128xbf16>, vector<256x128xf32> -> vector<256x128xf32>
    %c0_10 = arith.constant 0 : index
    %c0_11 = arith.constant 0 : index
    %12 = vector.load %arg6[%c0_10, %c0_11] : memref<1x128xf32, #tpu.memory_space<vmem>>, vector<1x128xf32>
    %13 = vector.broadcast %12 : vector<1x128xf32> to vector<256x128xf32>
    %14 = arith.addf %11, %13 : vector<256x128xf32>
    %cst_12 = arith.constant 0.000000e+00 : f32
    %15 = vector.broadcast %cst_12 : f32 to vector<256x128xf32>
    %16 = arith.maximumf %14, %15 : vector<256x128xf32>
    %17 = vector.shape_cast %16 : vector<256x128xf32> to vector<2x128x128xf32>
    %cst_13 = arith.constant dense<0.000000e+00> : vector<128x128xf32>
    %18 = vector.multi_reduction <add>, %17, %cst_13 [0] : vector<2x128x128xf32> to vector<128x128xf32>
    %c0_14 = arith.constant 0 : index
    %c0_15 = arith.constant 0 : index
    %19 = vector.load %arg7[%c0_14, %c0_15] : memref<2x128xbf16, #tpu.memory_space<vmem>>, vector<2x128xbf16>
    %20 = arith.truncf %18 : vector<128x128xf32> to vector<128x128xbf16>
    %cst_16 = arith.constant dense<0.000000e+00> : vector<2x128xf32>
    %21 = tpu.matmul %19, %20, %cst_16 {dimension_numbers = #tpu.dot_dimension_numbers<[1], [1], [0], [0], [0, 0, 1, 0], [], []>} : vector<2x128xbf16>, vector<128x128xbf16>, vector<2x128xf32> -> vector<2x128xf32>
    %c0_i32 = arith.constant 0 : i32
    %22 = arith.cmpi eq, %arg1, %c0_i32 : i32
    %23 = arith.extui %22 : i1 to i32
    %c0_i32_17 = arith.constant 0 : i32
    %24 = arith.cmpi ne, %23, %c0_i32_17 : i32
    scf.if %24 {
      %c0_22 = arith.constant 0 : index
      %c0_23 = arith.constant 0 : index
      %31 = vector.load %arg9[%c0_22, %c0_23] : memref<2x128xf32, #tpu.memory_space<vmem>>, vector<2x128xf32>
      tpu.vector_store %arg9[%c0_22, %c0_23], %21 {strides = array<i32>} : memref<2x128xf32, #tpu.memory_space<vmem>>, vector<2x128xf32>,
    } else {
    }
    %c0_i32_18 = arith.constant 0 : i32
    %25 = arith.cmpi ne, %arg1, %c0_i32_18 : i32
    %26 = arith.extui %25 : i1 to i32
    %c0_i32_19 = arith.constant 0 : i32
    %27 = arith.cmpi ne, %26, %c0_i32_19 : i32
    scf.if %27 {
      %c0_22 = arith.constant 0 : index
      %c0_23 = arith.constant 0 : index
      %31 = vector.load %arg9[%c0_22, %c0_23] : memref<2x128xf32, #tpu.memory_space<vmem>>, vector<2x128xf32>
      %32 = arith.addf %31, %21 : vector<2x128xf32>
      %c0_24 = arith.constant 0 : index
      %c0_25 = arith.constant 0 : index
      %33 = vector.load %arg9[%c0_24, %c0_25] : memref<2x128xf32, #tpu.memory_space<vmem>>, vector<2x128xf32>
      tpu.vector_store %arg9[%c0_24, %c0_25], %32 {strides = array<i32>} : memref<2x128xf32, #tpu.memory_space<vmem>>, vector<2x128xf32>,
    } else {
    }
    %c0_i32_20 = arith.constant 0 : i32
    %28 = arith.cmpi eq, %arg1, %c0_i32_20 : i32
    %29 = arith.extui %28 : i1 to i32
    %c0_i32_21 = arith.constant 0 : i32
    %30 = arith.cmpi ne, %29, %c0_i32_21 : i32
    scf.if %30 {
      %c0_22 = arith.constant 0 : index
      %c0_23 = arith.constant 0 : index
      %31 = vector.load %arg9[%c0_22, %c0_23] : memref<2x128xf32, #tpu.memory_space<vmem>>, vector<2x128xf32>
      %cst_24 = arith.constant 5.000000e-01 : f32
      %32 = vector.broadcast %cst_24 : f32 to vector<2x128xf32>
      %33 = arith.mulf %31, %32 : vector<2x128xf32>
      %c0_25 = arith.constant 0 : index
      %c0_26 = arith.constant 0 : index
      %34 = vector.load %arg8[%c0_25, %c0_26] : memref<2x1xf32, #tpu.memory_space<vmem>>, vector<2x1xf32>
      %35 = vector.broadcast %34 : vector<2x1xf32> to vector<2x128xf32>
      %36 = arith.addf %33, %35 : vector<2x128xf32>
      %37 = tpu.iota {dimensions = array<i32: 0>} : vector<2x128xi32>
      %cst_27 = arith.constant 0.000000e+00 : f32
      %38 = vector.broadcast %cst_27 : f32 to vector<2x128xf32>
      %39 = arith.maximumf %36, %38 : vector<2x128xf32>
      %40 = math.absf %36 : vector<2x128xf32>
      %cst_28 = arith.constant 0.000000e+00 : f32
      %41 = vector.broadcast %cst_28 : f32 to vector<2x128xf32>
      %42 = arith.subf %41, %40 : vector<2x128xf32>
      %43 = math.exp %42 : vector<2x128xf32>
      %44 = math.log1p %43 : vector<2x128xf32>
      %45 = arith.addf %39, %44 : vector<2x128xf32>
      %c0_i32_29 = arith.constant 0 : i32
      %46 = vector.broadcast %c0_i32_29 : i32 to vector<2x128xi32>
      %47 = arith.cmpi eq, %37, %46 : vector<2x128xi32>
      %cst_30 = arith.constant 0.899999976 : f32
      %48 = vector.broadcast %cst_30 : f32 to vector<2x128xf32>
      %49 = arith.mulf %48, %45 : vector<2x128xf32>
      %cst_31 = arith.constant 1.000000e-01 : f32
      %50 = vector.broadcast %cst_31 : f32 to vector<2x128xf32>
      %51 = arith.addf %50, %49 : vector<2x128xf32>
      %52 = arith.select %47, %36, %51 : vector<2x128xi1>, vector<2x128xf32>
      %c0_32 = arith.constant 0 : index
      %c0_33 = arith.constant 0 : index
      %53 = vector.load %arg9[%c0_32, %c0_33] : memref<2x128xf32, #tpu.memory_space<vmem>>, vector<2x128xf32>
      tpu.vector_store %arg9[%c0_32, %c0_33], %52 {strides = array<i32>} : memref<2x128xf32, #tpu.memory_space<vmem>>, vector<2x128xf32>,
    } else {
    }
    return
  }
  func.func @transform_0(%arg0: i32, %arg1: i32) -> (i32, i32, i32) {
    %c0_i32 = arith.constant 0 : i32
    %c0_i32_0 = arith.constant 0 : i32
    return %arg1, %arg0, %c0_i32 : i32, i32, i32
  }
  func.func @transform_1(%arg0: i32, %arg1: i32) -> (i32, i32) {
    %c0_i32 = arith.constant 0 : i32
    %c0_i32_0 = arith.constant 0 : i32
    %c0_i32_1 = arith.constant 0 : i32
    return %c0_i32, %c0_i32_0 : i32, i32
  }
  func.func @transform_2(%arg0: i32, %arg1: i32) -> (i32, i32) {
    %c0_i32 = arith.constant 0 : i32
    %c0_i32_0 = arith.constant 0 : i32
    %c0_i32_1 = arith.constant 0 : i32
    return %c0_i32, %c0_i32_0 : i32, i32
  }
  func.func @transform_3(%arg0: i32, %arg1: i32) -> (i32, i32) {
    %c0_i32 = arith.constant 0 : i32
    %c0_i32_0 = arith.constant 0 : i32
    %c0_i32_1 = arith.constant 0 : i32
    return %c0_i32, %c0_i32_0 : i32, i32
  }
  func.func @transform_4(%arg0: i32, %arg1: i32) -> (i32, i32) {
    %c0_i32 = arith.constant 0 : i32
    %c0_i32_0 = arith.constant 0 : i32
    %c0_i32_1 = arith.constant 0 : i32
    return %c0_i32, %c0_i32_0 : i32, i32
  }
  func.func @transform_5(%arg0: i32, %arg1: i32) -> (i32, i32) {
    %c0_i32 = arith.constant 0 : i32
    %c0_i32_0 = arith.constant 0 : i32
    %c0_i32_1 = arith.constant 0 : i32
    return %c0_i32, %c0_i32_0 : i32, i32
  }
  func.func @transform_6(%arg0: i32, %arg1: i32) -> (i32, i32) {
    %c0_i32 = arith.constant 0 : i32
    %c0_i32_0 = arith.constant 0 : i32
    %c0_i32_1 = arith.constant 0 : i32
    return %c0_i32, %c0_i32_0 : i32, i32
  }
  func.func @transform_7(%arg0: i32, %arg1: i32) -> (i32, i32) {
    %c0_i32 = arith.constant 0 : i32
    %c0_i32_0 = arith.constant 0 : i32
    return %c0_i32, %arg0 : i32, i32
  }
}

</mosaic_0001>

<bundles_post_ra>
// kernel: decoder_forward.1
= control target key start
LH: loop header
LB: loop body
LE: loop exit
PB: predicated region body
PF: predicated region fallthrough
CT: control target
= control target key end

     0   :  { %vm1062_vm0 = vmmov 0   ;;  %s1346_s1 = inlined_call_operand.vmem [shape: bf16[128,128], index: 1, kind: input, shape index: {}]   ;;  %s1347_s0 = inlined_call_operand.vmem [shape: bf16[2,128,128], index: 0, kind: input, shape index: {}]   ;;  %s1348_s3 = inlined_call_operand.vmem [shape: bf16[128,128], index: 3, kind: input, shape index: {}]   ;;  %s1349_s2 = inlined_call_operand.vmem [shape: f32[1,128], index: 2, kind: input, shape index: {}]   ;;  %s1350_s6 = inlined_call_operand.vmem [shape: f32[2,1], index: 6, kind: input, shape index: {}]   ;;  %s1351_s4 = inlined_call_operand.vmem [shape: f32[1,128], index: 4, kind: input, shape index: {}]   ;;  %s1352_s5 = inlined_call_operand.vmem [shape: bf16[2,128], index: 5, kind: input, shape index: {}]   ;;  %s1353_s7 = inlined_call_operand.vmem [shape: f32[2,128], index: 7, kind: output, shape index: {}]  }
   0x1   :  { %v1025_v0 = vld [vmem:[%s1346_s1 + $0x38] sm:$0xff]   ;;  %v1026_v1 = vld [vmem:[%s1346_s1 + $0x30] sm:$0xff]   ;;  %v1027_v2 = vld [vmem:[%s1346_s1 + $0x28] sm:$0xff]  }
   0x2   :  { %905 = vmatprep.subr.bf16.mxu0 %v1025_v0  ;;  %v1028_v3 = vld [vmem:[%s1346_s1 + $0x20] sm:$0xff]   ;;  %v1029_v5 = vld [vmem:[%s1346_s1 + $0x18] sm:$0xff]   ;;  %v1030_v6 = vld [vmem:[%s1346_s1 + $0x10] sm:$0xff]  }
   0x3   :  { %906 = vmatpush3.bf16.msra.mxu0 %v1025_v0  ;;  %v1033_v4 = vld [vmem:[%s1347_s0] sm:$0xff]   ;;  %v1031_v7 = vld [vmem:[%s1346_s1 + $0x8] sm:$0xff]   ;;  %v1049_v9 = vld [vmem:[%s1348_s3 + $0x38] sm:$0xff]  }
   0x4   :  { %907 = vmatprep.subr.bf16.mxu0 %v1026_v1  ;;  %921 = vmatprep.mubr.bf16.mxu0 %v1033_v4  ;;  %v1032_v8 = vld [vmem:[%s1346_s1] sm:$0xff]   ;;  %v1050_v10 = vld [vmem:[%s1348_s3 + $0x30] sm:$0xff]   ;;  %v1034_v11 = vld [vmem:[%s1347_s0 + $0x8] sm:$0xff]  }
   0x5   :  { %953 = vmatprep.subr.bf16.mxu1 %v1049_v9  ;;  %v1051_v12 = vld [vmem:[%s1348_s3 + $0x28] sm:$0xff]   ;;  %v1035_v13 = vld [vmem:[%s1347_s0 + $0x10] sm:$0xff]   ;;  %v1052_v14 = vld [vmem:[%s1348_s3 + $0x20] sm:$0xff]  }
   0x6   :  { %954 = vmatpush3.bf16.msra.mxu1 %v1049_v9  ;;  %v1053_v15 = vld [vmem:[%s1348_s3 + $0x18] sm:$0xff]   ;;  %v1037_v17 = vld [vmem:[%s1347_s0 + $0x20] sm:$0xff]   ;;  %v1038_v18 = vld [vmem:[%s1347_s0 + $0x28] sm:$0xff]  }
   0x7   :  { %908 = vmatpush3.bf16.msra.mxu0 %v1026_v1  ;;  %955 = vmatprep.subr.bf16.mxu1 %v1050_v10  ;;  %v1036_v16 = vld [vmem:[%s1347_s0 + $0x18] sm:$0xff]   ;;  %v1039_v19 = vld [vmem:[%s1347_s0 + $0x30] sm:$0xff]   ;;  %v1041_v21 = vld [vmem:[%s1347_s0 + $0x40] sm:$0xff]  }
   0x8   :  { %909 = vmatprep.subr.bf16.mxu0 %v1027_v2  ;;  %v1040_v20 = vld [vmem:[%s1347_s0 + $0x38] sm:$0xff]   ;;  %v1042_v22 = vld [vmem:[%s1347_s0 + $0x48] sm:$0xff]   ;;  %v1043_v23 = vld [vmem:[%s1347_s0 + $0x50] sm:$0xff]  }
   0x9   :  { %v1044_v24 = vld [vmem:[%s1347_s0 + $0x58] sm:$0xff]   ;;  %v1045_v25 = vld [vmem:[%s1347_s0 + $0x60] sm:$0xff]   ;;  %v1046_v26 = vld [vmem:[%s1347_s0 + $0x68] sm:$0xff]  }
   0xa   :  { %956 = vmatpush3.bf16.msra.mxu1 %v1050_v10  ;;  %v1047_v27 = vld [vmem:[%s1347_s0 + $0x70] sm:$0xff]   ;;  %v1048_v28 = vld [vmem:[%s1347_s0 + $0x78] sm:$0xff]   ;;  %v1055_v30 = vld [vmem:[%s1348_s3 + $0x8] sm:$0xff]  }
   0xb   :  { %910 = vmatpush3.bf16.msra.mxu0 %v1027_v2  ;;  %957 = vmatprep.subr.bf16.mxu1 %v1051_v12  ;;  %v1054_v29 = vld [vmem:[%s1348_s3 + $0x10] sm:$0xff]   ;;  %v1056_v31 = vld [vmem:[%s1348_s3] sm:$0xff]  }
   0xc   :  { %911 = vmatprep.subr.bf16.mxu0 %v1028_v3  ;;  %v1203_v34 = vld [vmem:[%s1349_s2] ss:$0 sm:$0xff] }
   0xe   :  { %958 = vmatpush3.bf16.msra.mxu1 %v1051_v12 }
   0xf   :  { %912 = vmatpush3.bf16.msra.mxu0 %v1028_v3  ;;  %959 = vmatprep.subr.bf16.mxu1 %v1052_v14 }
  0x10   :  { %913 = vmatprep.subr.bf16.mxu0 %v1029_v5 }
  0x12   :  { %960 = vmatpush3.bf16.msra.mxu1 %v1052_v14 }
  0x13   :  { %914 = vmatpush3.bf16.msra.mxu0 %v1029_v5  ;;  %961 = vmatprep.subr.bf16.mxu1 %v1053_v15 }
  0x14   :  { %915 = vmatprep.subr.bf16.mxu0 %v1030_v6 }
  0x16   :  { %962 = vmatpush3.bf16.msra.mxu1 %v1053_v15 }
  0x17   :  { %916 = vmatpush3.bf16.msra.mxu0 %v1030_v6  ;;  %963 = vmatprep.subr.bf16.mxu1 %v1054_v29 }
  0x18   :  { %917 = vmatprep.subr.bf16.mxu0 %v1031_v7 }
  0x1a   :  { %964 = vmatpush3.bf16.msra.mxu1 %v1054_v29 }
  0x1b   :  { %918 = vmatpush3.bf16.msra.mxu0 %v1031_v7  ;;  %965 = vmatprep.subr.bf16.mxu1 %v1055_v30 }
  0x1c   :  { %919 = vmatprep.subr.bf16.mxu0 %v1032_v8 }
  0x1e   :  { %966 = vmatpush3.bf16.msra.mxu1 %v1055_v30 }
  0x1f   :  { %920 = vmatpush3.bf16.msra.mxu0 %v1032_v8  ;;  %967 = vmatprep.subr.bf16.mxu1 %v1056_v31 }
  0x22   :  { %922 = vmatmul.mubr.bf16.vlgmr.msra.gmra.mxu0 %v1034_v11  ;;  %968 = vmatpush3.bf16.msra.mxu1 %v1056_v31 }
  0x23   :  { %925 = vmatprep.mubr.bf16.mxu0 %v1035_v13 }
  0x2a   :  { %926 = vmatmul.mubr.bf16.gmra.mxu0 %v1036_v16 }
  0x2b   :  { %929 = vmatprep.mubr.bf16.mxu0 %v1037_v17 }
  0x32   :  { %930 = vmatmul.mubr.bf16.gmra.mxu0 %v1038_v18 }
  0x33   :  { %933 = vmatprep.mubr.bf16.mxu0 %v1039_v19 }
  0x3a   :  { %934 = vmatmul.mubr.bf16.gmra.mxu0 %v1040_v20 }
  0x3b   :  { %937 = vmatprep.mubr.bf16.mxu0 %v1041_v21 }
  0x42   :  { %938 = vmatmul.mubr.bf16.gmra.mxu0 %v1042_v22 }
  0x43   :  { %941 = vmatprep.mubr.bf16.mxu0 %v1043_v23 }
  0x4a   :  { %942 = vmatmul.mubr.bf16.gmra.mxu0 %v1044_v24 }
  0x4b   :  { %945 = vmatprep.mubr.bf16.mxu0 %v1045_v25 }
  0x52   :  { %946 = vmatmul.mubr.bf16.gmra.mxu0 %v1046_v26 }
  0x53   :  { %949 = vmatprep.mubr.bf16.mxu0 %v1047_v27 }
  0x5a   :  { %950 = vmatmul.mubr.bf16.gmra.mxu0 %v1048_v28 }
  0xe2   :  { %v923_v32 = vpop.f32.mrf.mxu0 }
  0xe3   :  { %v269_v38 = vadd.f32 %v923_v32, %v1203_v34 }
  0xe4   :  { %v260_v33 = vpop.f32.mrf.mxu0 }
  0xe5   :  { %v261_v36 = vadd.f32 %v1203_v34, %v260_v33  ;;  %v389_v45 = vmax.f32 %v269_v38, 0.0 }
  0xe6   :  { %v924_v35 = vpop.f32.mrf.mxu0 }
  0xe7   :  { %v272_v37 = vadd.f32 %v924_v35, %v1203_v34  ;;  %v387_v43 = vmax.f32 %v261_v36, 0.0 }
  0xe8   :  { %v263_v39 = vpop.f32.mrf.mxu0 }
  0xe9   :  { %v264_v40 = vadd.f32 %v1203_v34, %v263_v39  ;;  %v390_v41 = vmax.f32 %v272_v37, 0.0 }
  0xea   :  { %v927_v42 = vpop.f32.mrf.mxu0 }
  0xeb   :  { %v388_v44 = vmax.f32 %v264_v40, 0.0  ;;  %v420_v48 = vpack.c.bf16 %v390_v41, %v389_v45  ;;  %v285_v52 = vadd.f32 %v927_v42, %v1203_v34 }
  0xec   :  { %v276_v46 = vpop.f32.mrf.mxu0 }
  0xed   :  { %v419_v47 = vpack.c.bf16 %v388_v44, %v387_v43  ;;  %v277_v50 = vadd.f32 %v1203_v34, %v276_v46  ;;  %v393_v59 = vmax.f32 %v285_v52, 0.0 }
  0xee   :  { %v928_v49 = vpop.f32.mrf.mxu0 }
  0xef   :  { %v288_v51 = vadd.f32 %v928_v49, %v1203_v34  ;;  %969 = vmatprep.mubr.bf16.mxu1 %v419_v47  ;;  %v391_v57 = vmax.f32 %v277_v50, 0.0 }
  0xf0   :  { %v279_v53 = vpop.f32.mrf.mxu0  ;;  %970 = vmatmul.mubr.bf16.vlgmr.msra.gmra.mxu1 %v420_v48 }
  0xf1   :  { %v280_v54 = vadd.f32 %v1203_v34, %v279_v53  ;;  %v394_v55 = vmax.f32 %v288_v51, 0.0 }
  0xf2   :  { %v931_v56 = vpop.f32.mrf.mxu0 }
  0xf3   :  { %v392_v58 = vmax.f32 %v280_v54, 0.0  ;;  %v422_v62 = vpack.c.bf16 %v394_v55, %v393_v59  ;;  %v301_v2 = vadd.f32 %v931_v56, %v1203_v34 }
  0xf4   :  { %v292_v60 = vpop.f32.mrf.mxu0 }
  0xf5   :  { %v421_v61 = vpack.c.bf16 %v392_v58, %v391_v57  ;;  %v293_v0 = vadd.f32 %v1203_v34, %v292_v60  ;;  %v397_v9 = vmax.f32 %v301_v2, 0.0 }
  0xf6   :  { %v932_v63 = vpop.f32.mrf.mxu0 }
  0xf7   :  { %v304_v1 = vadd.f32 %v932_v63, %v1203_v34  ;;  %973 = vmatprep.mubr.bf16.mxu1 %v421_v61  ;;  %v395_v7 = vmax.f32 %v293_v0, 0.0 }
  0xf8   :  { %v295_v3 = vpop.f32.mrf.mxu0  ;;  %974 = vmatmul.mubr.bf16.gmra.mxu1 %v422_v62 }
  0xf9   :  { %v296_v4 = vadd.f32 %v1203_v34, %v295_v3  ;;  %v398_v5 = vmax.f32 %v304_v1, 0.0 }
  0xfa   :  { %v935_v6 = vpop.f32.mrf.mxu0 }
  0xfb   :  { %v396_v8 = vmax.f32 %v296_v4, 0.0  ;;  %v424_v12 = vpack.c.bf16 %v398_v5, %v397_v9  ;;  %v317_v16 = vadd.f32 %v935_v6, %v1203_v34 }
  0xfc   :  { %v308_v10 = vpop.f32.mrf.mxu0 }
  0xfd   :  { %v423_v11 = vpack.c.bf16 %v396_v8, %v395_v7  ;;  %v309_v14 = vadd.f32 %v1203_v34, %v308_v10  ;;  %v401_v23 = vmax.f32 %v317_v16, 0.0 }
  0xfe   :  { %v936_v13 = vpop.f32.mrf.mxu0 }
  0xff   :  { %v320_v15 = vadd.f32 %v936_v13, %v1203_v34  ;;  %977 = vmatprep.mubr.bf16.mxu1 %v423_v11  ;;  %v399_v21 = vmax.f32 %v309_v14, 0.0 }
 0x100   :  { %v311_v17 = vpop.f32.mrf.mxu0  ;;  %978 = vmatmul.mubr.bf16.gmra.mxu1 %v424_v12 }
 0x101   :  { %v312_v18 = vadd.f32 %v1203_v34, %v311_v17  ;;  %v402_v19 = vmax.f32 %v320_v15, 0.0 }
 0x102   :  { %v939_v20 = vpop.f32.mrf.mxu0 }
 0x103   :  { %v400_v22 = vmax.f32 %v312_v18, 0.0  ;;  %v426_v26 = vpack.c.bf16 %v402_v19, %v401_v23  ;;  %v333_v30 = vadd.f32 %v939_v20, %v1203_v34  ;;  %v1061_v18 = vmov 0.0  }
 0x104   :  { %v324_v24 = vpop.f32.mrf.mxu0  ;;  %1001 = vmatprep.subr.bf16.mxu0 %v1061_v18  ;;  %1017 = vmatprep.mubr.msk.bf16.mxu0 %vm1062_vm0, %v1061_v18 }
 0x105   :  { %v425_v25 = vpack.c.bf16 %v400_v22, %v399_v21  ;;  %v325_v28 = vadd.f32 %v1203_v34, %v324_v24  ;;  %v405_v38 = vmax.f32 %v333_v30, 0.0  ;;  %v1063_v22 = vmov 0  }
 0x106   :  { %v940_v27 = vpop.f32.mrf.mxu0  ;;  %1024 = vset.pattern.permute.xlu0 %v1063_v22 }
 0x107   :  { %v336_v29 = vadd.f32 %v940_v27, %v1203_v34  ;;  %981 = vmatprep.mubr.bf16.mxu1 %v425_v25  ;;  %v403_v36 = vmax.f32 %v325_v28, 0.0 }
 0x108   :  { %v327_v31 = vpop.f32.mrf.mxu0  ;;  %982 = vmatmul.mubr.bf16.gmra.mxu1 %v426_v26 }
 0x109   :  { %v328_v32 = vadd.f32 %v1203_v34, %v327_v31  ;;  %v406_v33 = vmax.f32 %v336_v29, 0.0 }
 0x10a   :  { %v943_v35 = vpop.f32.mrf.mxu0 }
 0x10b   :  { %v404_v37 = vmax.f32 %v328_v32, 0.0  ;;  %v428_v41 = vpack.c.bf16 %v406_v33, %v405_v38  ;;  %v349_v45 = vadd.f32 %v943_v35, %v1203_v34  ;;  %v1257_v35 = vld [vmem:[%s1351_s4] ss:$0 sm:$0xff] }
 0x10c   :  { %v340_v39 = vpop.f32.mrf.mxu0 }
 0x10d   :  { %v427_v40 = vpack.c.bf16 %v404_v37, %v403_v36  ;;  %v341_v43 = vadd.f32 %v1203_v34, %v340_v39  ;;  %v409_v52 = vmax.f32 %v349_v45, 0.0 }
 0x10e   :  { %v944_v42 = vpop.f32.mrf.mxu0 }
 0x10f   :  { %v352_v44 = vadd.f32 %v944_v42, %v1203_v34  ;;  %985 = vmatprep.mubr.bf16.mxu1 %v427_v40  ;;  %v407_v50 = vmax.f32 %v341_v43, 0.0 }
 0x110   :  { %v343_v46 = vpop.f32.mrf.mxu0  ;;  %986 = vmatmul.mubr.bf16.gmra.mxu1 %v428_v41 }
 0x111   :  { %v344_v47 = vadd.f32 %v1203_v34, %v343_v46  ;;  %v410_v48 = vmax.f32 %v352_v44, 0.0 }
 0x112   :  { %v947_v49 = vpop.f32.mrf.mxu0 }
 0x113   :  { %v408_v51 = vmax.f32 %v344_v47, 0.0  ;;  %v430_v55 = vpack.c.bf16 %v410_v48, %v409_v52  ;;  %v365_v59 = vadd.f32 %v947_v49, %v1203_v34 }
 0x114   :  { %v356_v53 = vpop.f32.mrf.mxu0 }
 0x115   :  { %v429_v54 = vpack.c.bf16 %v408_v51, %v407_v50  ;;  %v357_v57 = vadd.f32 %v1203_v34, %v356_v53  ;;  %v413_v2 = vmax.f32 %v365_v59, 0.0 }
 0x116   :  { %v948_v56 = vpop.f32.mrf.mxu0 }
 0x117   :  { %v368_v58 = vadd.f32 %v948_v56, %v1203_v34  ;;  %989 = vmatprep.mubr.bf16.mxu1 %v429_v54  ;;  %v411_v0 = vmax.f32 %v357_v57, 0.0 }
 0x118   :  { %v359_v60 = vpop.f32.mrf.mxu0  ;;  %990 = vmatmul.mubr.bf16.gmra.mxu1 %v430_v55 }
 0x119   :  { %v360_v61 = vadd.f32 %v1203_v34, %v359_v60  ;;  %v414_v62 = vmax.f32 %v368_v58, 0.0 }
 0x11a   :  { %v951_v63 = vpop.f32.mrf.mxu0 }
 0x11b   :  { %v412_v1 = vmax.f32 %v360_v61, 0.0  ;;  %v432_v5 = vpack.c.bf16 %v414_v62, %v413_v2  ;;  %v381_v9 = vadd.f32 %v951_v63, %v1203_v34 }
 0x11c   :  { %v372_v3 = vpop.f32.mrf.mxu0 }
 0x11d   :  { %v431_v4 = vpack.c.bf16 %v412_v1, %v411_v0  ;;  %v373_v7 = vadd.f32 %v1203_v34, %v372_v3  ;;  %v417_v15 = vmax.f32 %v381_v9, 0.0 }
 0x11e   :  { %v952_v6 = vpop.f32.mrf.mxu0 }
 0x11f   :  { %v384_v8 = vadd.f32 %v952_v6, %v1203_v34  ;;  %993 = vmatprep.mubr.bf16.mxu1 %v431_v4  ;;  %v415_v13 = vmax.f32 %v373_v7, 0.0 }
 0x120   :  { %v375_v10 = vpop.f32.mrf.mxu0  ;;  %994 = vmatmul.mubr.bf16.gmra.mxu1 %v432_v5 }
 0x121   :  { %v376_v11 = vadd.f32 %v1203_v34, %v375_v10  ;;  %v418_v12 = vmax.f32 %v384_v8, 0.0  ;;  %v781_v34 = vld [vmem:[%s1350_s6] sm:$0x3] }
 0x122   :  { %784 = vperm.xlu0 %1024, %v781_v34  }
 0x123   :  { %v416_v14 = vmax.f32 %v376_v11, 0.0  ;;  %v434_v17 = vpack.c.bf16 %v418_v12, %v417_v15 }
 0x125   :  { %v433_v16 = vpack.c.bf16 %v416_v14, %v415_v13 }
 0x127   :  { %997 = vmatprep.mubr.bf16.mxu1 %v433_v16 }
 0x128   :  { %998 = vmatmul.mubr.bf16.gmra.mxu1 %v434_v17 }
 0x1b0   :  { %v971_v19 = vpop.f32.mrf.mxu1 }
 0x1b1   :  { %v549_v38 = vadd.f32 %v971_v19, %v1257_v35 }
 0x1b2   :  { %v540_v20 = vpop.f32.mrf.mxu1 }
 0x1b3   :  { %v541_v39 = vadd.f32 %v1257_v35, %v540_v20  ;;  %v669_v43 = vmax.f32 %v549_v38, 0.0 }
 0x1b4   :  { %v972_v21 = vpop.f32.mrf.mxu1 }
 0x1b5   :  { %v552_v44 = vadd.f32 %v972_v21, %v1257_v35  ;;  %v667_v47 = vmax.f32 %v541_v39, 0.0 }
 0x1b6   :  { %v543_v23 = vpop.f32.mrf.mxu1 }
 0x1b7   :  { %v544_v49 = vadd.f32 %v1257_v35, %v543_v23  ;;  %v670_v54 = vmax.f32 %v552_v44, 0.0 }
 0x1b8   :  { %v975_v24 = vpop.f32.mrf.mxu1 }
 0x1b9   :  { %v668_v59 = vmax.f32 %v544_v49, 0.0  ;;  %v565_v63 = vadd.f32 %v975_v24, %v1257_v35 }
 0x1ba   :  { %v556_v25 = vpop.f32.mrf.mxu1 }
 0x1bb   :  { %v557_v5 = vadd.f32 %v1257_v35, %v556_v25  ;;  %v673_v11 = vmax.f32 %v565_v63, 0.0 }
 0x1bc   :  { %v976_v26 = vpop.f32.mrf.mxu1 }
 0x1bd   :  { %v568_v1 = vadd.f32 %v976_v26, %v1257_v35  ;;  %v671_v17 = vmax.f32 %v557_v5, 0.0 }
 0x1be   :  { %v559_v27 = vpop.f32.mrf.mxu1 }
 0x1bf   :  { %v560_v7 = vadd.f32 %v1257_v35, %v559_v27  ;;  %v674_v13 = vmax.f32 %v568_v1, 0.0 }
 0x1c0   :  { %v1242_v28 = vpop.f32.mrf.mxu1 }
 0x1c1   :  { %v672_v20 = vmax.f32 %v560_v7, 0.0 }
 0x1c2   :  { %v1244_v29 = vpop.f32.mrf.mxu1 }
 0x1c4   :  { %v1246_v30 = vpop.f32.mrf.mxu1 }
 0x1c6   :  { %v1248_v31 = vpop.f32.mrf.mxu1 }
 0x1c8   :  { %v1250_v32 = vpop.f32.mrf.mxu1 }
 0x1ca   :  { %v1252_v33 = vpop.f32.mrf.mxu1 }
 0x1cc   :  { %v984_v36 = vpop.f32.mrf.mxu1 }
 0x1cd   :  { %v600_v44 = vadd.f32 %v984_v36, %v1257_v35 }
 0x1ce   :  { %v1259_v37 = vpop.f32.mrf.mxu1 }
 0x1d0   :  { %v987_v40 = vpop.f32.mrf.mxu1 }
 0x1d1   :  { %v613_v41 = vadd.f32 %v987_v40, %v1257_v35 }
 0x1d2   :  { %v604_v42 = vpop.f32.mrf.mxu1 }
 0x1d3   :  { %v685_v45 = vmax.f32 %v613_v41, 0.0  ;;  %v605_v46 = vadd.f32 %v1257_v35, %v604_v42 }
 0x1d4   :  { %v988_v48 = vpop.f32.mrf.mxu1 }
 0x1d5   :  { %v1267_v50 = vadd.f32 %v685_v45, %v669_v43  ;;  %v683_v51 = vmax.f32 %v605_v46, 0.0  ;;  %v616_v52 = vadd.f32 %v988_v48, %v1257_v35  ;;  %v597_v43 = vadd.f32 %v1250_v32, %v1257_v35 }
 0x1d6   :  { %v607_v53 = vpop.f32.mrf.mxu1  ;;  %v589_v32 = vadd.f32 %v1257_v35, %v1252_v33  ;;  %v581_v33 = vadd.f32 %v1242_v28, %v1257_v35  ;;  %v573_v28 = vadd.f32 %v1257_v35, %v1244_v29  ;;  %v715_v29 = vld [vmem:[%s1352_s5] sm:$0x1] }
 0x1d7   :  { %v1270_v55 = vadd.f32 %v683_v51, %v667_v47  ;;  %v686_v56 = vmax.f32 %v616_v52, 0.0  ;;  %v608_v57 = vadd.f32 %v1257_v35, %v607_v53  ;;  %v681_v49 = vmax.f32 %v597_v43, 0.0 }
 0x1d8   :  { %v991_v58 = vpop.f32.mrf.mxu1  ;;  %v682_v51 = vmax.f32 %v600_v44, 0.0  ;;  %v679_v63 = vmax.f32 %v589_v32, 0.0 }
 0x1d9   :  { %v1273_v60 = vadd.f32 %v686_v56, %v670_v54  ;;  %v684_v61 = vmax.f32 %v608_v57, 0.0  ;;  %v629_v62 = vadd.f32 %v991_v58, %v1257_v35  ;;  %v592_v54 = vadd.f32 %v1257_v35, %v1259_v37 }
 0x1da   :  { %v620_v0 = vpop.f32.mrf.mxu1  ;;  %v584_v37 = vadd.f32 %v1246_v30, %v1257_v35  ;;  %v576_v30 = vadd.f32 %v1257_v35, %v1248_v31 }
 0x1db   :  { %v717_v2 = vpack.c.bf16 %v1273_v60, %v1267_v50  ;;  %v1280_v3 = vadd.f32 %v684_v61, %v668_v59  ;;  %v621_v4 = vadd.f32 %v1257_v35, %v620_v0  ;;  %v689_v9 = vmax.f32 %v629_v62, 0.0  ;;  %v785_v60 = vpop.permute.xlu0 %784 }
 0x1dc   :  { %v992_v6 = vpop.f32.mrf.mxu1  ;;  %v680_v61 = vmax.f32 %v592_v54, 0.0 }
 0x1dd   :  { %v716_v8 = vpack.c.bf16 %v1280_v3, %v1270_v55  ;;  %v632_v10 = vadd.f32 %v992_v6, %v1257_v35  ;;  %v687_v14 = vmax.f32 %v621_v4, 0.0  ;;  %v1289_v21 = vadd.f32 %v689_v9, %v673_v11 }
 0x1de   :  { %v623_v12 = vpop.f32.mrf.mxu1  ;;  %v678_v9 = vmax.f32 %v584_v37, 0.0  ;;  %v677_v11 = vmax.f32 %v581_v33, 0.0 }
 0x1df   :  { %v690_v15 = vmax.f32 %v632_v10, 0.0  ;;  %v624_v16 = vadd.f32 %v1257_v35, %v623_v12  ;;  %v1293_v24 = vadd.f32 %v687_v14, %v671_v17 }
 0x1e0   :  { %v995_v19 = vpop.f32.mrf.mxu1 }
 0x1e1   :  { %v1291_v22 = vadd.f32 %v690_v15, %v674_v13  ;;  %v688_v34 = vmax.f32 %v624_v16, 0.0  ;;  %v645_v4 = vadd.f32 %v995_v19, %v1257_v35  ;;  %v676_v19 = vmax.f32 %v576_v30, 0.0 }
 0x1e2   :  { %v636_v23 = vpop.f32.mrf.mxu1 }
 0x1e3   :  { %v719_v25 = vpack.c.bf16 %v1291_v22, %v1289_v21  ;;  %v704_v26 = vadd.f32 %v688_v34, %v672_v20  ;;  %v693_v10 = vmax.f32 %v645_v4, 0.0  ;;  %v637_v15 = vadd.f32 %v1257_v35, %v636_v23 }
 0x1e4   :  { %v996_v27 = vpop.f32.mrf.mxu1  ;;  %v675_v21 = vmax.f32 %v573_v28, 0.0 }
 0x1e5   :  { %v718_v38 = vpack.c.bf16 %v704_v26, %v1293_v24  ;;  %v648_v0 = vadd.f32 %v996_v27, %v1257_v35  ;;  %v709_v14 = vadd.f32 %v693_v10, %v677_v11  ;;  %v691_v20 = vmax.f32 %v637_v15, 0.0 }
 0x1e6   :  { %v639_v39 = vpop.f32.mrf.mxu1 }
 0x1e7   :  { %v694_v6 = vmax.f32 %v648_v0, 0.0  ;;  %v640_v13 = vadd.f32 %v1257_v35, %v639_v39  ;;  %v707_v34 = vadd.f32 %v691_v20, %v675_v21 }
 0x1e8   :  { %v999_v40 = vpop.f32.mrf.mxu1 }
 0x1e9   :  { %v661_v41 = vadd.f32 %v999_v40, %v1257_v35  ;;  %v710_v12 = vadd.f32 %v694_v6, %v678_v9  ;;  %v692_v17 = vmax.f32 %v640_v13, 0.0 }
 0x1ea   :  { %v652_v42 = vpop.f32.mrf.mxu1 }
 0x1eb   :  { %v697_v46 = vmax.f32 %v661_v41, 0.0  ;;  %v653_v57 = vadd.f32 %v1257_v35, %v652_v42  ;;  %v721_v16 = vpack.c.bf16 %v710_v12, %v709_v14  ;;  %v708_v22 = vadd.f32 %v692_v17, %v676_v19 }
 0x1ec   :  { %v1000_v45 = vpop.f32.mrf.mxu1  ;;  %v788_v41 = vlaneseq }
 0x1ed   :  { %v664_v47 = vadd.f32 %v1000_v45, %v1257_v35  ;;  %v713_v56 = vadd.f32 %v697_v46, %v681_v49  ;;  %v695_v62 = vmax.f32 %v653_v57, 0.0  ;;  %v720_v24 = vpack.c.bf16 %v708_v22, %v707_v34 }
 0x1ee   :  { %v655_v48 = vpop.f32.mrf.mxu1  ;;  %v789_v46 = vshrl.u32 %v788_v41, 7 }
 0x1ef   :  { %v698_v52 = vmax.f32 %v664_v47, 0.0  ;;  %v656_v53 = vadd.f32 %v1257_v35, %v655_v48  ;;  %v711_v5 = vadd.f32 %v695_v62, %v679_v63 }
 0x1f0   :  { %vm805_vm2 = vcmp.eq.s32.totalorder %v789_v46, 0 }
 0x1f1   :  { %v714_v58 = vadd.f32 %v698_v52, %v682_v51  ;;  %v696_v59 = vmax.f32 %v656_v53, 0.0 }
 0x1f3   :  { %v723_v36 = vpack.c.bf16 %v714_v58, %v713_v56  ;;  %v712_v1 = vadd.f32 %v696_v59, %v680_v61 }
 0x1f5   :  { %1002 = vmatpush3.bf16.xpose.msra.mxu0 %v723_v36  ;;  %v722_v7 = vpack.c.bf16 %v712_v1, %v711_v5 }
 0x1f6   :  { %1003 = vmatprep.subr.bf16.mxu0 %v1061_v18 }
 0x1fd   :  { %1004 = vmatpush3.bf16.xpose.msra.mxu0 %v722_v7 }
 0x1fe   :  { %1005 = vmatprep.subr.bf16.mxu0 %v1061_v18 }
 0x205   :  { %1006 = vmatpush3.bf16.xpose.msra.mxu0 %v721_v16 }
 0x206   :  { %1007 = vmatprep.subr.bf16.mxu0 %v1061_v18 }
 0x20d   :  { %1008 = vmatpush3.bf16.xpose.msra.mxu0 %v720_v24 }
 0x20e   :  { %1009 = vmatprep.subr.bf16.mxu0 %v1061_v18 }
 0x215   :  { %1010 = vmatpush3.bf16.xpose.msra.mxu0 %v719_v25 }
 0x216   :  { %1011 = vmatprep.subr.bf16.mxu0 %v1061_v18 }
 0x21d   :  { %1012 = vmatpush3.bf16.xpose.msra.mxu0 %v718_v38 }
 0x21e   :  { %1013 = vmatprep.subr.bf16.mxu0 %v1061_v18 }
 0x225   :  { %1014 = vmatpush3.bf16.xpose.msra.mxu0 %v717_v2 }
 0x226   :  { %1015 = vmatprep.subr.bf16.mxu0 %v1061_v18 }
 0x22d   :  { %1016 = vmatpush3.bf16.xpose.msra.mxu0 %v716_v8 }
 0x234   :  { %1018 = vmatmul.mubr.bf16.vlgmr.msra.gmra.mxu0 %v715_v29 }
 0x2f4   :  { %v758_v31 = vpop.f32.mrf.mxu0 }
 0x2f5   :  { %768 = vst [vmem:[%s1353_s7] sm:$0x3] %v758_v31 }
 0x2f6   :  { %v1019_v35 = vpop.f32.mrf.mxu0 }
 0x2f8   :  { %v761_v23 = vpop.f32.mrf.mxu0 }
 0x2fa   :  { %v1020_v50 = vpop.f32.mrf.mxu0 }
 0x2fc   :  { %v779_v18 = vld [vmem:[%s1353_s7] sm:$0x3] }
 0x2fd   :  { %v780_v55 = vmul.f32 0.5, %v779_v18 }
 0x2ff   :  { %v787_v2 = vadd.f32 %v785_v60, %v780_v55 }
 0x301   :  { %v791_v3 = vand.u32 2147483647, %v787_v2  ;;  %v790_v45 = vmax.f32 %v787_v2, 0.0 }
 0x303   :  { %v792_v8 = vsub.f32 0.0, %v791_v3 }
 0x305   :  { %v793_v25 = vmul.f32 1.442695, %v792_v8 }
 0x307   :  { %1057 = vpow2.f32 %v793_v25 }
 0x314   :  { %v1058_v26 = vpop.eup %1057 }
 0x315   :  { %v795_v27 = vadd.f32 1.0, %v1058_v26  ;;  %v798_v38 = vmul.f32 -0.5, %v1058_v26  ;;  %v801_v40 = vand.u32 2147483647, %v1058_v26 }
 0x317   :  { %1059 = vlog2.f32 %v795_v27  ;;  %v799_v39 = vadd.f32 1.0, %v798_v38  ;;  %vm802_vm1 = vcmp.lt.f32.partialorder %v801_v40, 0.0004427343 }
 0x319   :  { %v800_v44 = vmul.f32 %v1058_v26, %v799_v39 }
 0x324   :  { %v1060_v42 = vpop.eup %1059 }
 0x325   :  { %v797_v43 = vmul.f32 0.6931472, %v1060_v42 }
 0x327   :  { %v803_v47 = vsel %vm802_vm1, %v800_v44, %v797_v43 }
 0x328   :  { %v804_v48 = vadd.f32 %v803_v47, %v790_v45 }
 0x32a   :  { %v806_v49 = vmul.f32 0.9, %v804_v48 }
 0x32c   :  { %v807_v51 = vadd.f32 0.1, %v806_v49 }
 0x32e   :  { %v808_v52 = vsel %vm805_vm2, %v787_v2, %v807_v51 }
 0x32f   :  { %809 = vst [vmem:[%s1353_s7] sm:$0x3] %v808_v52 }

</bundles_post_ra>
